<compile_context>
chip_gen: v7x
topology: tpu7x:2x2x1
jax: 0.10.0
libtpu: 0.0.40
codegen_flags: <defaults>
</compile_context>

<pallas_src>
import functools

import jax
import jax.numpy as jnp
from jax.experimental import pallas as pl
from jax.experimental.pallas import tpu as pltpu

BN_EPS = 1e-5                        # PyTorch BatchNorm2d default
VMEM_LIMIT_BYTES = 48 * 1024 * 1024  # safe on v7x (64 MiB/TC) and v5e/v6e (128 MiB)
TILE_VMEM_BUDGET = 24 * 1024 * 1024  # double-buffered working-set budget


def _round_up(x, m):
    return (x + m - 1) // m * m


# ----------------------------- Pallas kernels ------------------------------


def _gemm_stats_kernel(p_ref, w_ref, y_ref, s_ref, q_ref):
    """Row tile of the im2col GEMM (bf16 operands, fp32 accumulation) plus
    per-channel partial sum / sum-of-squares for training-mode BatchNorm."""
    y = jnp.dot(p_ref[...], w_ref[...], preferred_element_type=jnp.float32)
    y_ref[...] = y
    s_ref[...] = jnp.sum(y, axis=0, keepdims=True).reshape(s_ref.shape)
    q_ref[...] = jnp.sum(y * y, axis=0, keepdims=True).reshape(q_ref.shape)


def _bn_act_kernel(y_ref, scale_ref, shift_ref, o_ref, *, relu):
    """Folded BatchNorm affine (y*scale + shift) + optional ReLU."""
    y = y_ref[...] * scale_ref[...] + shift_ref[...]
    if relu:
        y = jnp.maximum(y, 0.0)
    o_ref[...] = y.astype(o_ref.dtype)


def _bn_relu_add_relu_kernel(y_ref, scale_ref, shift_ref, res_ref, o_ref):
    """Folded BN + ReLU, fused residual add and final ReLU (ResBlock tail)."""
    y = jnp.maximum(y_ref[...] * scale_ref[...] + shift_ref[...], 0.0)
    o_ref[...] = jnp.maximum(y + res_ref[...], 0.0).astype(o_ref.dtype)


# ----------------------------- kernel wrappers ------------------------------


def _pick_tile_rows(k, c_pad, budget=TILE_VMEM_BUDGET):
    """Largest row tile (multiple of 8) whose double-buffered tiles fit VMEM."""
    per_row_p1 = 2 * (k * 2 + c_pad * 4)       # bf16 patches + f32 conv output
    per_row_p2 = 2 * (3 * c_pad * 4)           # y + residual + output tiles
    per_row = max(per_row_p1, per_row_p2)
    fixed = 2 * k * c_pad * 2 + 16 * c_pad * 4  # resident weights + vectors
    tr = (budget - fixed) // per_row
    return max(8, (tr // 8) * 8)


def conv_bn(patches, w_mat, gamma, beta, *, relu, residual=None,
            tile_rows=None, out_dtype=jnp.float32):
    """im2col conv (GEMM) + training-mode BatchNorm + activation.

    patches: (rows, K), w_mat: (K, cout).
      residual is None : act(bn(patches @ w))                 (act = ReLU if relu)
      residual given   : relu(relu(bn(patches @ w)) + residual)
    Conv bias is omitted on purpose: it is cancelled by the BN mean subtraction.
    Returns (rows, cout) in out_dtype.
    """
    rows, k = patches.shape
    cout = w_mat.shape[1]
    c_pad = _round_up(cout, 128)                  # lane-dense channel axis

    if tile_rows is None:
        tile_rows = _pick_tile_rows(k, c_pad)
    tile_rows = _round_up(max(8, min(tile_rows, _round_up(rows, 8))), 8)
    rows_pad = _round_up(rows, tile_rows)
    n_tiles = rows_pad // tile_rows

    # Zero-padded rows give zero conv outputs, so they do not perturb the BN
    # sums; the statistics below divide by the true `rows`.
    p = jnp.pad(patches.astype(jnp.bfloat16), ((0, rows_pad - rows), (0, 0)))
    w = jnp.pad(w_mat.astype(jnp.bfloat16), ((0, 0), (0, c_pad - cout)))

    row_spec = pl.BlockSpec((tile_rows, c_pad), lambda i: (i, 0))
    vec_spec = pl.BlockSpec((1, c_pad), lambda i: (0, 0))

    # ---- pass 1: row-tiled GEMM + per-tile channel statistics -------------
    gemm_cost = pl.CostEstimate(
        flops=2 * rows_pad * k * c_pad,
        transcendentals=0,
        bytes_accessed=int(p.size * 2 + w.size * 2 + rows_pad * c_pad * 4))
    y, s, q = pl.pallas_call(
        _gemm_stats_kernel,
        out_shape=(jax.ShapeDtypeStruct((rows_pad, c_pad), jnp.float32),
                   jax.ShapeDtypeStruct((n_tiles, 1, c_pad), jnp.float32),
                   jax.ShapeDtypeStruct((n_tiles, 1, c_pad), jnp.float32)),
        grid=(n_tiles,),
        in_specs=[pl.BlockSpec((tile_rows, k), lambda i: (i, 0)),
                  pl.BlockSpec((k, c_pad), lambda i: (0, 0))],
        out_specs=(row_spec,
                   pl.BlockSpec((1, 1, c_pad), lambda i: (i, 0, 0)),
                   pl.BlockSpec((1, 1, c_pad), lambda i: (i, 0, 0))),
        compiler_params=pltpu.CompilerParams(
            dimension_semantics=("parallel",),
            vmem_limit_bytes=VMEM_LIMIT_BYTES),
        cost_estimate=gemm_cost,
    )(p, w)

    # ---- fold BN into per-channel scale/shift (tiny per-channel math) -----
    mean = jnp.sum(s[:, 0, :], axis=0) / rows
    msq = jnp.sum(q[:, 0, :], axis=0) / rows
    var = jnp.maximum(msq - mean * mean, 0.0)     # biased variance (train mode)
    g = jnp.pad(gamma.astype(jnp.float32), (0, c_pad - cout))
    b = jnp.pad(beta.astype(jnp.float32), (0, c_pad - cout))
    scale_v = g * jax.lax.rsqrt(var + BN_EPS)
    shift_v = b - mean * scale_v
    scale = scale_v.reshape(1, c_pad)
    shift = shift_v.reshape(1, c_pad)

    # ---- pass 2: fused BN affine + activation (+ residual add + ReLU) -----
    args = [y, scale, shift]
    in_specs = [row_spec, vec_spec, vec_spec]
    if residual is not None:
        r = jnp.pad(residual.astype(jnp.float32),
                    ((0, rows_pad - rows), (0, c_pad - residual.shape[1])))
        args.append(r)
        in_specs.append(row_spec)
        kernel = _bn_relu_add_relu_kernel
    else:
        kernel = functools.partial(_bn_act_kernel, relu=relu)

    out = pl.pallas_call(
        kernel,
        out_shape=jax.ShapeDtypeStruct((rows_pad, c_pad), out_dtype),
        grid=(n_tiles,),
        in_specs=in_specs,
        out_specs=row_spec,
        compiler_params=pltpu.CompilerParams(
            dimension_semantics=("parallel",),
            vmem_limit_bytes=VMEM_LIMIT_BYTES),
        cost_estimate=pl.CostEstimate(
            flops=4 * rows_pad * c_pad, transcendentals=0,
            bytes_accessed=int(rows_pad * c_pad * 4 * (3 if residual is not None
                                                       else 2))),
    )(*args)
    return out[:rows, :cout]


# ------------------------------- glue (JAX) ---------------------------------


def im2col_3x3(x_nhwc, stride):
    """3x3 patches with padding=1. Returns ((N*Ho*Wo, 9*C), (N, Ho, Wo))."""
    n, h, w, c = x_nhwc.shape
    xp = jnp.pad(x_nhwc, ((0, 0), (1, 1), (1, 1), (0, 0)))
    ho = (h + 2 - 3) // stride + 1
    wo = (w + 2 - 3) // stride + 1
    cols = []
    for kh in range(3):
        for kw in range(3):
            cols.append(xp[:, kh:kh + (ho - 1) * stride + 1:stride,
                           kw:kw + (wo - 1) * stride + 1:stride, :])
    p = jnp.stack(cols, axis=3)  # (n, ho, wo, 9, c) with 9 = kh*3+kw
    return p.reshape(n * ho * wo, 9 * c), (n, ho, wo)


def res_block_forward(x_nchw, params, downsample, tile_rows=None):
    """ResBlock.forward. x_nchw: (N, Cin, H, W) -> (N, Cout, Ho, Wo)."""
    x = jnp.transpose(x_nchw, (0, 2, 3, 1)).astype(jnp.float32)  # NHWC
    n, h, w, cin = x.shape
    stride1 = 2 if downsample else 1

    # conv1 (3x3, stride1, pad 1) + bn1 + relu   (intermediate stored bf16)
    p1, (_, ho, wo) = im2col_3x3(x, stride1)
    w1 = jnp.transpose(params["conv1_w"], (2, 3, 1, 0)).reshape(9 * cin, -1)
    cout = w1.shape[1]
    y1 = conv_bn(p1, w1, params["bn1_g"], params["bn1_b"],
                 relu=True, tile_rows=tile_rows, out_dtype=jnp.bfloat16)
    y1 = y1.reshape(n, ho, wo, cout)

    # shortcut
    if downsample:
        xs = x[:, ::2, ::2, :].reshape(n * ho * wo, cin)  # 1x1 conv stride 2
        ws = params["sc_w"].reshape(cout, cin).T          # (cin, cout)
        sc = conv_bn(xs, ws, params["sc_bn_g"], params["sc_bn_b"],
                     relu=False, tile_rows=tile_rows)
    else:
        assert cin == cout, "identity shortcut requires in_channels == out_channels"
        sc = x.reshape(n * h * w, cin)

    # conv2 (3x3, stride 1, pad 1) + bn2 + relu, fused residual add + relu
    p2, _ = im2col_3x3(y1, 1)
    w2 = jnp.transpose(params["conv2_w"], (2, 3, 1, 0)).reshape(9 * cout, cout)
    out = conv_bn(p2, w2, params["bn2_g"], params["bn2_b"],
                  relu=True, residual=sc, tile_rows=tile_rows)
    out = out.reshape(n, ho, wo, cout)
    return jnp.transpose(out, (0, 3, 1, 2))  # back to NCHW


# --------------------------- reference (pure JAX) ----------------------------


def reference_forward(x, params, downsample):
    def conv(x, w, b, stride, pad):
        y = jax.lax.conv_general_dilated(
            x, w, window_strides=(stride, stride),
            padding=[(pad, pad), (pad, pad)],
            dimension_numbers=("NCHW", "OIHW", "NCHW"),
            precision=jax.lax.Precision.HIGHEST)
        return y + b[None, :, None, None]

    def bn(y, g, be):
        mean = jnp.mean(y, axis=(0, 2, 3), keepdims=True)
        var = jnp.mean(jnp.square(y - mean), axis=(0, 2, 3), keepdims=True)
        return ((y - mean) * jax.lax.rsqrt(var + BN_EPS)
                * g[None, :, None, None] + be[None, :, None, None])

    if downsample:
        sc = bn(conv(x, params["sc_w"], params["sc_b"], 2, 0),
                params["sc_bn_g"], params["sc_bn_b"])
        stride1 = 2
    else:
        sc = x
        stride1 = 1
    h = jax.nn.relu(bn(conv(x, params["conv1_w"], params["conv1_b"], stride1, 1),
                       params["bn1_g"], params["bn1_b"]))
    h = jax.nn.relu(bn(conv(h, params["conv2_w"], params["conv2_b"], 1, 1),
                       params["bn2_g"], params["bn2_b"]))
    return jax.nn.relu(h + sc)


# ------------------------------- parameters ---------------------------------


def init_params(key, cin, cout, downsample):
    ks = jax.random.split(key, 12)
    p = {
        "conv1_w": 0.1 * jax.random.normal(ks[0], (cout, cin, 3, 3), jnp.float32),
        "conv1_b": 0.1 * jax.random.normal(ks[1], (cout,), jnp.float32),
        "conv2_w": 0.1 * jax.random.normal(ks[2], (cout, cout, 3, 3), jnp.float32),
        "conv2_b": 0.1 * jax.random.normal(ks[3], (cout,), jnp.float32),
        "bn1_g": 1.0 + 0.1 * jax.random.normal(ks[4], (cout,), jnp.float32),
        "bn1_b": 0.1 * jax.random.normal(ks[5], (cout,), jnp.float32),
        "bn2_g": 1.0 + 0.1 * jax.random.normal(ks[6], (cout,), jnp.float32),
        "bn2_b": 0.1 * jax.random.normal(ks[7], (cout,), jnp.float32),
    }
    if downsample:
        p.update({
            "sc_w": 0.1 * jax.random.normal(ks[8], (cout, cin, 1, 1), jnp.float32),
            "sc_b": 0.1 * jax.random.normal(ks[9], (cout,), jnp.float32),
            "sc_bn_g": 1.0 + 0.1 * jax.random.normal(ks[10], (cout,), jnp.float32),
            "sc_bn_b": 0.1 * jax.random.normal(ks[11], (cout,), jnp.float32),
        })
    return p


if __name__ == "__main__":
    key = jax.random.PRNGKey(0)
    kx, kp1, kp2 = jax.random.split(key, 3)
    x = jax.random.normal(kx, (2, 4, 16, 16), jnp.float32)

    # Case 1: downsample ResBlock (in=4 -> out=8, stride 2, conv+BN shortcut)
    params_ds = init_params(kp1, 4, 8, True)
    ref_ds = reference_forward(x, params_ds, True)
    out_ds = jax.block_until_ready(res_block_forward(x, params_ds, True))
    assert out_ds.shape == (2, 8, 8, 8), out_ds.shape
    assert jnp.allclose(out_ds, ref_ds, atol=2e-2, rtol=2e-2)

    # Case 2: identity-shortcut ResBlock (in=out=4, stride 1)
    params_id = init_params(kp2, 4, 4, False)
    ref_id = reference_forward(x, params_id, False)
    out_id = jax.block_until_ready(res_block_forward(x, params_id, False))
    assert out_id.shape == (2, 4, 16, 16), out_id.shape
    assert jnp.allclose(out_id, ref_id, atol=2e-2, rtol=2e-2)

    # Case 3: force small row tiles to exercise the cross-tile BN statistics
    # path (multiple grid steps per conv) against the same references.
    out_mt_id = jax.block_until_ready(
        res_block_forward(x, params_id, False, tile_rows=64))
    assert jnp.allclose(out_mt_id, ref_id, atol=2e-2, rtol=2e-2)
    out_mt_ds = jax.block_until_ready(
        res_block_forward(x, params_ds, True, tile_rows=64))
    assert jnp.allclose(out_mt_ds, ref_ds, atol=2e-2, rtol=2e-2)

    print("KERNEL_OK")
</pallas_src>

<mosaic_0001>
module attributes {stable_mosaic.version = 11 : i64} {
  func.func @_gemm_stats_kernel(%arg0: i32, %arg1: memref<128x36xbf16, #tpu.memory_space<vmem>>, %arg2: memref<36x128xbf16, #tpu.memory_space<vmem>>, %arg3: memref<128x128xf32, #tpu.memory_space<vmem>>, %arg4: memref<1x1x128xf32, #tpu.memory_space<vmem>>, %arg5: memref<1x1x128xf32, #tpu.memory_space<vmem>>) attributes {dimension_semantics = [#tpu.dimension_semantics<parallel>], iteration_bounds = array<i64: 1>, scalar_prefetch = 0 : i64, scratch_operands = 0 : i64, tpu.core_type = #tpu.core_type<tc>, window_params = [{transform_indices = @transform_0, window_bounds = array<i64: 128, 36>}, {pipeline_mode = #tpu.pipeline_mode<synchronous>, transform_indices = @transform_1, window_bounds = array<i64: 36, 128>}, {transform_indices = @transform_2, window_bounds = array<i64: 128, 128>}, {transform_indices = @transform_3, window_bounds = array<i64: 1, 1, 128>}, {transform_indices = @transform_4, window_bounds = array<i64: 1, 1, 128>}]} {
    %c0 = arith.constant 0 : index
    %c0_0 = arith.constant 0 : index
    %0 = vector.load %arg1[%c0, %c0_0] : memref<128x36xbf16, #tpu.memory_space<vmem>>, vector<128x36xbf16>
    %c0_1 = arith.constant 0 : index
    %c0_2 = arith.constant 0 : index
    %1 = vector.load %arg2[%c0_1, %c0_2] : memref<36x128xbf16, #tpu.memory_space<vmem>>, vector<36x128xbf16>
    %cst = arith.constant dense<0.000000e+00> : vector<128x128xf32>
    %2 = tpu.matmul %0, %1, %cst {dimension_numbers = #tpu.dot_dimension_numbers<[1], [0], [0], [1], [0, 0, 1, 1], [], []>} : vector<128x36xbf16>, vector<36x128xbf16>, vector<128x128xf32> -> vector<128x128xf32>
    %c0_3 = arith.constant 0 : index
    %c0_4 = arith.constant 0 : index
    %3 = vector.load %arg3[%c0_3, %c0_4] : memref<128x128xf32, #tpu.memory_space<vmem>>, vector<128x128xf32>
    tpu.vector_store %arg3[%c0_3, %c0_4], %2 {strides = array<i32>} : memref<128x128xf32, #tpu.memory_space<vmem>>, vector<128x128xf32>,
    %cst_5 = arith.constant dense<0.000000e+00> : vector<128xf32>
    %4 = vector.multi_reduction <add>, %2, %cst_5 [0] : vector<128x128xf32> to vector<128xf32>
    %5 = vector.shape_cast %4 : vector<128xf32> to vector<1x128xf32>
    %6 = vector.shape_cast %5 : vector<1x128xf32> to vector<1x1x128xf32>
    %c0_6 = arith.constant 0 : index
    %c0_7 = arith.constant 0 : index
    %c0_8 = arith.constant 0 : index
    %7 = vector.load %arg4[%c0_6, %c0_7, %c0_8] : memref<1x1x128xf32, #tpu.memory_space<vmem>>, vector<1x1x128xf32>
    tpu.vector_store %arg4[%c0_6, %c0_7, %c0_8], %6 {strides = array<i32>} : memref<1x1x128xf32, #tpu.memory_space<vmem>>, vector<1x1x128xf32>,
    %8 = arith.mulf %2, %2 : vector<128x128xf32>
    %cst_9 = arith.constant dense<0.000000e+00> : vector<128xf32>
    %9 = vector.multi_reduction <add>, %8, %cst_9 [0] : vector<128x128xf32> to vector<128xf32>
    %10 = vector.shape_cast %9 : vector<128xf32> to vector<1x128xf32>
    %11 = vector.shape_cast %10 : vector<1x128xf32> to vector<1x1x128xf32>
    %c0_10 = arith.constant 0 : index
    %c0_11 = arith.constant 0 : index
    %c0_12 = arith.constant 0 : index
    %12 = vector.load %arg5[%c0_10, %c0_11, %c0_12] : memref<1x1x128xf32, #tpu.memory_space<vmem>>, vector<1x1x128xf32>
    tpu.vector_store %arg5[%c0_10, %c0_11, %c0_12], %11 {strides = array<i32>} : memref<1x1x128xf32, #tpu.memory_space<vmem>>, vector<1x1x128xf32>,
    return
  }
  func.func @transform_0(%arg0: i32) -> (i32, i32) {
    %c0_i32 = arith.constant 0 : i32
    %c0_i32_0 = arith.constant 0 : i32
    return %arg0, %c0_i32 : i32, i32
  }
  func.func @transform_1(%arg0: i32) -> (i32, i32) {
    %c0_i32 = arith.constant 0 : i32
    %c0_i32_0 = arith.constant 0 : i32
    %c0_i32_1 = arith.constant 0 : i32
    return %c0_i32, %c0_i32_0 : i32, i32
  }
  func.func @transform_2(%arg0: i32) -> (i32, i32) {
    %c0_i32 = arith.constant 0 : i32
    %c0_i32_0 = arith.constant 0 : i32
    return %arg0, %c0_i32 : i32, i32
  }
  func.func @transform_3(%arg0: i32) -> (i32, i32, i32) {
    %c0_i32 = arith.constant 0 : i32
    %c0_i32_0 = arith.constant 0 : i32
    %c0_i32_1 = arith.constant 0 : i32
    return %arg0, %c0_i32, %c0_i32_0 : i32, i32, i32
  }
  func.func @transform_4(%arg0: i32) -> (i32, i32, i32) {
    %c0_i32 = arith.constant 0 : i32
    %c0_i32_0 = arith.constant 0 : i32
    %c0_i32_1 = arith.constant 0 : i32
    return %arg0, %c0_i32, %c0_i32_0 : i32, i32, i32
  }
}

</mosaic_0001>

<bundles_post_ra>
// kernel: tpu_custom_call.1
= control target key start
LH: loop header
LB: loop body
LE: loop exit
PB: predicated region body
PF: predicated region fallthrough
CT: control target
= control target key end

     0   :  { %10 = vsyncpa [#allocation3], 0  ;;  %vm93_vm0 = vcmask 293888   ;;  %vm118_vm1 = vcmask 1041408   ;;  %s624_s0 = inlined_call_operand.vmem [shape: bf16[128,36], index: 0, kind: input, shape index: {}]   ;;  %s625_s1 = inlined_call_operand.vmem [shape: bf16[36,128], index: 1, kind: input, shape index: {}]   ;;  %s626_s2 = inlined_call_operand.hbm [shape: f32[128,128], index: 2, kind: output, shape index: {0}]   ;;  %s627_s3 = inlined_call_operand.hbm [shape: f32[1,1,128], index: 3, kind: output, shape index: {1}]   ;;  %s628_s4 = inlined_call_operand.hbm [shape: f32[1,1,128], index: 4, kind: output, shape index: {2}]  }
   0x1   :  { %v403_v0 = vld [vmem:[%s625_s1] sm:$0xff]   ;;  %v404_v1 = vld [vmem:[%s625_s1 + $0x8] sm:$0xff]   ;;  %v405_v2 = vld [vmem:[%s625_s1 + $0x10] ss:$0 sps:$4 sm:$0x33]  }
   0x2   :  { %368 = vmatprep.subr.bf16.mxu0 %v403_v0  ;;  %v406_v3 = vld [vmem:[%s624_s0] sm:$0xff]   ;;  %390 = vmatprep.subr.bf16.mxu1 %v403_v0  ;;  %v120_v5 = vsel %vm118_vm1, %v405_v2, 0  ;;  %v407_v6 = vld [vmem:[%s624_s0 + $0x8] sm:$0xff]  }
   0x3   :  { %369 = vmatpush3.bf16.msra.mxu0 %v403_v0  ;;  %393 = vmatpush3.bf16.msra.mxu1 %v403_v0  ;;  %v410_v4 = vld [vmem:[%s624_s0 + $0x20] sm:$0xff]   ;;  %v411_v7 = vld [vmem:[%s624_s0 + $0x28] sm:$0xff]  }
   0x4   :  { %370 = vmatprep.subr.bf16.mxu0 %v404_v1  ;;  %374 = vmatprep.mubr.msk.bf16.mxu0 %vm93_vm0, %v406_v3 }
   0x5   :  { %391 = vmatprep.subr.bf16.mxu1 %v404_v1  ;;  %382 = vmatprep.mubr.msk.bf16.mxu1 %vm93_vm0, %v410_v4 }
   0x7   :  { %371 = vmatpush3.bf16.msra.mxu0 %v404_v1  ;;  %394 = vmatpush3.bf16.msra.mxu1 %v404_v1 }
   0x8   :  { %396 = vmatprep.subr.msk.bf16.mxu0 %vm118_vm1, %v405_v2  ;;  %397 = vmatprep.subr.msk.bf16.mxu1 %vm118_vm1, %v405_v2 }
   0x9   :  { %11 = vsyncpa [#allocation5], 0  ;;  %v408_v8 = vld [vmem:[%s624_s0 + $0x10] sm:$0xff]   ;;  %v409_v10 = vld [vmem:[%s624_s0 + $0x18] sm:$0xff]  }
   0xa   :  { %v412_v9 = vld [vmem:[%s624_s0 + $0x30] sm:$0xff]   ;;  %v413_v11 = vld [vmem:[%s624_s0 + $0x38] sm:$0xff]   ;;  %s484_s0 = smov [#allocation2]  }
   0xb   :  { %373 = vmatpush3.bf16.msra.mxu0 %v120_v5  ;;  %395 = vmatpush3.bf16.msra.mxu1 %v120_v5  ;;  %s300_s10 = sshll.u32 %s484_s0, 4  ;;  %s564_s10 = int_to_ptr.vmem [resolvable:$true] %s300_s10 }
   0xc   :  { %s414_s11 = scalar_lea.vmem %s564_s10, 2048  ;;  %p419_p1 = scmp.lt.s32.totalorder %s564_s10, %s564_s10 }
   0xd   :  { %p415_p0 = scmp.ne.s32.totalorder %s564_s10, %s414_s11  ;;  %p420_p2 = scmp.lt.s32.totalorder %s414_s11, %s414_s11 }
   0xe   :  { %375 = vmatmul.mubr.msk.bf16.vlgmr.msra.gmra.mrb[0].mxu0 %vm93_vm0, %v407_v6  ;;  %383 = vmatmul.mubr.msk.bf16.vlgmr.msra.gmra.mrb[0].mxu1 %vm93_vm0, %v411_v7 }
   0xf   :  { %378 = vmatprep.mubr.msk.bf16.mxu0 %vm93_vm0, %v408_v8  ;;  %386 = vmatprep.mubr.msk.bf16.mxu1 %vm93_vm0, %v412_v9  ;;  %p421_p3 = por %p420_p2, %p419_p1 }
  0x11   :  { %p422_p4 = pnand %p421_p3, %p415_p0 }
  0x16   :  { %379 = vmatmul.mubr.msk.bf16.gmra.mrb[4].mxu0 %vm93_vm0, %v409_v10  ;;  %387 = vmatmul.mubr.msk.bf16.gmra.mrb[4].mxu1 %vm93_vm0, %v413_v11 }
  0xe1   :  { %v376_v12 = vpop.f32.mrb[0].mxu0  ;;  %v555_v13 = vpop.f32.mrb[0].mxu1 }
  0xe2   :  { %221 = vst [vmem:[#allocation2 + $0x10] sm:$0xff] %v376_v12  ;;  %v156_v14 = vpop.f32.mrb[1].mxu0  ;;  %229 = vst [vmem:[#allocation2 + $0x50] sm:$0xff] %v555_v13  ;;  %v558_v15 = vpop.f32.mrb[1].mxu1  ;;  %v259_v23 = vmul.f32 %v376_v12, %v376_v12 }
  0xe3   :  { %219 = vst [vmem:[#allocation2] sm:$0xff] %v156_v14  ;;  %v377_v16 = vpop.f32.mrb[2].mxu0  ;;  %227 = vst [vmem:[#allocation2 + $0x40] sm:$0xff] %v558_v15  ;;  %v561_v17 = vpop.f32.mrb[2].mxu1  ;;  %v257_v20 = vmul.f32 %v156_v14, %v156_v14 }
  0xe4   :  { %222 = vst [vmem:[#allocation2 + $0x18] sm:$0xff] %v377_v16  ;;  %v159_v18 = vpop.f32.mrb[3].mxu0  ;;  %230 = vst [vmem:[#allocation2 + $0x58] sm:$0xff] %v561_v17  ;;  %v191_v19 = vpop.f32.mrb[3].mxu1  ;;  %v260_v26 = vmul.f32 %v377_v16, %v377_v16 }
  0xe5   :  { %220 = vst [vmem:[#allocation2 + $0x8] sm:$0xff] %v159_v18  ;;  %v235_v21 = vadd.f32 %v159_v18, %v156_v14  ;;  %v258_v22 = vmul.f32 %v159_v18, %v159_v18  ;;  %228 = vst [vmem:[#allocation2 + $0x48] sm:$0xff] %v191_v19 }
  0xe7   :  { %v236_v24 = vadd.f32 %v376_v12, %v235_v21  ;;  %v273_v25 = vadd.f32 %v258_v22, %v257_v20 }
  0xe9   :  { %v274_v27 = vadd.f32 %v273_v25, %v259_v23  ;;  %v380_v28 = vpop.f32.mrb[4].mxu0  ;;  %v237_v29 = vadd.f32 %v377_v16, %v236_v24  ;;  %v388_v30 = vpop.f32.mrb[4].mxu1 }
  0xea   :  { %225 = vst [vmem:[#allocation2 + $0x30] sm:$0xff] %v380_v28  ;;  %v172_v31 = vpop.f32.mrb[5].mxu0  ;;  %233 = vst [vmem:[#allocation2 + $0x70] sm:$0xff] %v388_v30  ;;  %v204_v32 = vpop.f32.mrb[5].mxu1 }
  0xeb   :  { %223 = vst [vmem:[#allocation2 + $0x20] sm:$0xff] %v172_v31  ;;  %v238_v33 = vadd.f32 %v237_v29, %v172_v31  ;;  %v261_v34 = vmul.f32 %v172_v31, %v172_v31  ;;  %v275_v35 = vadd.f32 %v274_v27, %v260_v26  ;;  %v381_v36 = vpop.f32.mrb[6].mxu0  ;;  %231 = vst [vmem:[#allocation2 + $0x60] sm:$0xff] %v204_v32  ;;  %v389_v37 = vpop.f32.mrb[6].mxu1 }
  0xec   :  { %226 = vst [vmem:[#allocation2 + $0x38] sm:$0xff] %v381_v36  ;;  %v175_v38 = vpop.f32.mrb[7].mxu0  ;;  %234 = vst [vmem:[#allocation2 + $0x78] sm:$0xff] %v389_v37  ;;  %v207_v39 = vpop.f32.mrb[7].mxu1 }
  0xed   :  { %v276_v40 = vadd.f32 %v275_v35, %v261_v34  ;;  %224 = vst [vmem:[#allocation2 + $0x28] sm:$0xff] %v175_v38  ;;  %v239_v41 = vadd.f32 %v238_v33, %v175_v38  ;;  %v262_v42 = vmul.f32 %v175_v38, %v175_v38  ;;  %232 = vst [vmem:[#allocation2 + $0x68] sm:$0xff] %v207_v39 }
  0xee   :  { %425 = shalt.err (!%p422_p4)
}
  0xef   :  { %s426_s14 = scalar_lea.hbm %s626_s2, 2048 }
  0xf0   :  { %p427_p5 = scmp.ne.s32.totalorder %s626_s2, %s426_s14  ;;  %p430_p6 = scmp.lt.u32.totalorder %s426_s14, %s626_s2 }
  0xf2   :  { %p432_p7 = pnand %p430_p6, %p427_p5 }
  0xf4   :  { %435 = shalt.err (!%p432_p7)
}
  0xf5   :  { %s485_s19 = smov 128   ;;  %s486_s20 = smov 8   ;;  %v263_v43 = vmul.f32 %v380_v28, %v380_v28  ;;  %v240_v44 = vadd.f32 %v380_v28, %v239_v41  ;;  %v277_v45 = vadd.f32 %v276_v40, %v262_v42  ;;  %v264_v46 = vmul.f32 %v381_v36, %v381_v36 }
  0xf6   :  { %306 = dma.vmem_to_hbm [thread:$0]  %s564_s10, 2048, %s626_s2, [#allocation3], %s485_s19, %s485_s19, %s486_s20   ;;  %v265_v49 = vmul.f32 %v558_v15, %v558_v15  ;;  %v266_v54 = vmul.f32 %v191_v19, %v191_v19  ;;  %v267_v55 = vmul.f32 %v555_v13, %v555_v13  ;;  %v268_v58 = vmul.f32 %v561_v17, %v561_v17 }
  0xf7   :  { %v278_v47 = vadd.f32 %v277_v45, %v263_v43  ;;  %v241_v48 = vadd.f32 %v381_v36, %v240_v44  ;;  %v269_v61 = vmul.f32 %v204_v32, %v204_v32  ;;  %v270_v2 = vmul.f32 %v207_v39, %v207_v39  ;;  %s487_s2 = smov [#allocation4]   ;;  %s488_s24 = smov [#allocation6]  }
  0xf8   :  { %v271_v3 = vmul.f32 %v388_v30, %v388_v30  ;;  %v272_v6 = vmul.f32 %v389_v37, %v389_v37  ;;  %s313_s23 = sshll.u32 %s487_s2, 4  ;;  %s323_s1 = sshll.u32 %s488_s24, 4  ;;  %s314_s23 = int_to_ptr.vmem [resolvable:$true] %s313_s23  ;;  %s592_s1 = int_to_ptr.vmem [resolvable:$true] %s323_s1 }
  0xf9   :  { %v242_v50 = vadd.f32 %v241_v48, %v558_v15  ;;  %v279_v51 = vadd.f32 %v278_v47, %v264_v46  ;;  %s436_s25 = scalar_lea.vmem %s314_s23, 16  ;;  %s440_s26 = scalar_lea.vmem %s314_s23, 32 }
  0xfa   :  { %p437_p8 = scmp.ne.s32.totalorder %s314_s23, %s436_s25  ;;  %p441_p9 = scmp.lt.s32.totalorder %s314_s23, %s314_s23 }
  0xfb   :  { %v280_v52 = vadd.f32 %v279_v51, %v265_v49  ;;  %v243_v53 = vadd.f32 %v242_v50, %v191_v19  ;;  %p442_p10 = scmp.lt.s32.totalorder %s440_s26, %s436_s25 }
  0xfd   :  { %v244_v56 = vadd.f32 %v555_v13, %v243_v53  ;;  %v281_v57 = vadd.f32 %v280_v52, %v266_v54  ;;  %p443_p11 = por %p442_p10, %p441_p9 }
  0xff   :  { %v282_v59 = vadd.f32 %v281_v57, %v267_v55  ;;  %v245_v60 = vadd.f32 %v561_v17, %v244_v56  ;;  %p444_p12 = pnand %p443_p11, %p437_p8 }
 0x101   :  { %v246_v62 = vadd.f32 %v245_v60, %v204_v32  ;;  %v283_v63 = vadd.f32 %v282_v59, %v268_v58 }
 0x103   :  { %v284_v0 = vadd.f32 %v283_v63, %v269_v61  ;;  %v247_v1 = vadd.f32 %v246_v62, %v207_v39 }
 0x105   :  { %v248_v4 = vadd.f32 %v388_v30, %v247_v1  ;;  %v285_v5 = vadd.f32 %v284_v0, %v270_v2 }
 0x107   :  { %v249_v7 = vadd.f32 %v389_v37, %v248_v4  ;;  %v286_v8 = vadd.f32 %v285_v5, %v271_v3 }
 0x109   :  { %v250_v9 = vrot.slane %v249_v7, 4  ;;  %v287_v10 = vadd.f32 %v286_v8, %v272_v6 }
 0x10b   :  { %v251_v11 = vadd.f32 %v250_v9, %v249_v7  ;;  %v288_v12 = vrot.slane %v287_v10, 4 }
 0x10d   :  { %v252_v13 = vrot.slane %v251_v11, 2  ;;  %v289_v14 = vadd.f32 %v288_v12, %v287_v10 }
 0x10f   :  { %v253_v15 = vadd.f32 %v252_v13, %v251_v11  ;;  %v290_v16 = vrot.slane %v289_v14, 2 }
 0x111   :  { %v254_v17 = vrot.slane %v253_v15, 1  ;;  %v291_v18 = vadd.f32 %v290_v16, %v289_v14 }
 0x113   :  { %v255_v19 = vadd.f32 %v254_v17, %v253_v15  ;;  %v292_v20 = vrot.slane %v291_v18, 1 }
 0x115   :  { %256 = vst [vmem:[#allocation4] sm:$0x1] %v255_v19  ;;  %v293_v21 = vadd.f32 %v292_v20, %v291_v18 }
 0x116   :  { %447 = shalt.err (!%p444_p12)
}
 0x117   :  { %s448_s29 = scalar_lea.hbm %s627_s3, 16 }
 0x118   :  { %p449_p13 = scmp.ne.s32.totalorder %s627_s3, %s448_s29  ;;  %p452_p0 = scmp.lt.u32.totalorder %s448_s29, %s627_s3 }
 0x11a   :  { %p454_p1 = pnand %p452_p0, %p449_p13 }
 0x11c   :  { %457 = shalt.err (!%p454_p1)
}
 0x11d   :  { %316 = dma.vmem_to_hbm [thread:$0]  %s314_s23, 16, %s627_s3, [#allocation5]   ;;  %294 = vst [vmem:[#allocation6] sm:$0x1] %v293_v21 }
 0x11e   :  { %s458_s0 = scalar_lea.vmem %s592_s1, 16  ;;  %s462_s10 = scalar_lea.vmem %s592_s1, 32 }
 0x11f   :  { %p459_p2 = scmp.ne.s32.totalorder %s592_s1, %s458_s0  ;;  %p463_p3 = scmp.lt.s32.totalorder %s592_s1, %s592_s1 }
 0x120   :  { %p464_p4 = scmp.lt.s32.totalorder %s462_s10, %s458_s0 }
 0x122   :  { %p465_p5 = por %p464_p4, %p463_p3 }
 0x124   :  { %p466_p6 = pnand %p465_p5, %p459_p2 }
 0x126   :  { %469 = shalt.err (!%p466_p6)
}
 0x127   :  { %s470_s13 = scalar_lea.hbm %s628_s4, 16 }
 0x128   :  { %p471_p7 = scmp.ne.s32.totalorder %s628_s4, %s470_s13  ;;  %p474_p8 = scmp.lt.u32.totalorder %s470_s13, %s628_s4 }
 0x12a   :  { %p476_p9 = pnand %p474_p8, %p471_p7 }
 0x12c   :  { %479 = shalt.err (!%p476_p9)
}
 0x12d   :  { %326 = dma.vmem_to_hbm [thread:$0]  %s592_s1, 16, %s628_s4, [#allocation5]  }
 0x12e   :  { %480 = dma.done.wait [#allocation3], 2048  }
 0x12f   :  { %481 = vsyncadd [#allocation3], 4294965248 }
 0x130   :  { %482 = dma.done.wait [#allocation5], 32  }
 0x131   :  { %483 = vsyncadd [#allocation5], 4294967264 }
 0x132   :  { %336 = vsyncpa [#allocation3], 1 }
 0x133   :  { %337 = vsyncpa [#allocation5], 1 }

</bundles_post_ra>
